<compile_context>
chip_gen: v6e
topology: v6e:2x2x1
jax: 0.10.0
libtpu: 0.0.40
codegen_flags: <defaults>
</compile_context>

<pallas_src>
import jax
import jax.numpy as jnp
from jax.experimental import pallas as pl
from jax.experimental.pallas import tpu as pltpu

# TODO(synk): in the original script these category sizes come from fitted
# sklearn encoders; fixed synthetic values are used here.
VALUE_TYPE_SHAPE = 8
EQUILIBRIUM_SHAPE = 16
SMILES_SHAPE = 2048
TOTAL_FEATURES = VALUE_TYPE_SHAPE + EQUILIBRIUM_SHAPE + SMILES_SHAPE  # 2072
BRANCH_OUT = 32 + 32 + 64                                             # 128
HIDDEN = 64


def _round_up(x, m):
    return ((x + m - 1) // m) * m


def _fused_mlp_kernel(x_ref, wb_ref, bb_ref, wc_ref, bc_ref, wo_ref, bo_ref,
                      out_ref):
    """One batch tile of the full forward pass.

    x_ref  : (TB, 2072) bf16/int8/f32 input rows (un-sliced)
    wb_ref : (2072, 128) bf16 block-diagonal fused branch weights
    bb_ref : (1, 128)    f32  fused branch bias
    wc_ref : (128, 64)   bf16 concat_dense weight
    bc_ref : (1, 64)     f32  concat_dense bias
    wo_ref : (1, 64)     f32  output_dense weight (as a row)
    bo_ref : (1, 1)      f32  output_dense bias
    out_ref: (TB, 1)     f32
    """
    x = x_ref[...]
    if x.dtype != jnp.bfloat16:
        # Dequant-on-load for int8 one-hot/fingerprint input (or f32
        # fallback). VPU cast, hidden under the input DMA (kernel is
        # HBM-bound). No-op branch when the producer already emits bf16.
        x = x.astype(jnp.bfloat16)

    # Branch stage (dense1/dense2/dense3 + concat) as one block-diagonal
    # matmul with a full 128-lane output; f32 accumulation.
    h = jnp.dot(x, wb_ref[...], preferred_element_type=jnp.float32)
    h = jnp.maximum(h + bb_ref[...], 0.0)

    # concat_dense: 128 -> 64, relu.
    h = jnp.dot(h.astype(jnp.bfloat16), wc_ref[...],
                preferred_element_type=jnp.float32)
    h = jnp.maximum(h + bc_ref[...], 0.0)

    # output_dense: 64 -> 1 on the VPU/XLU (broadcast-mul + lane reduction).
    out = jnp.sum(h * wo_ref[...], axis=1, keepdims=True) + bo_ref[...]
    out_ref[...] = out.astype(out_ref.dtype)


def my_model_forward(inputs, fused_params, *, tb=None):
    """inputs: [B, 2072] bf16 (preferred), int8 or f32
    (value_type | equilibrium | smiles concatenated)."""
    B, K = inputs.shape
    assert K == TOTAL_FEATURES
    wb, bb, wc, bc, wo, bo = fused_params
    in_bytes = inputs.dtype.itemsize

    # ---- batch tile selection -------------------------------------------
    if tb is None:
        # Big tiles amortize the ~0.35us/grid-step overhead; narrow input
        # dtypes keep the double-buffered tile inside the scoped-VMEM budget.
        tb = 1024 if in_bytes >= 4 else 2048
    # v7x megacore: keep >=2 batch tiles so both TensorCores get work
    # (harmless on single-TC v5e/v6e).
    tb = min(tb, max(128, _round_up(pl.cdiv(B, 2), 8)))
    if B <= 8:
        tb = B                              # tiny batch: one full-batch tile
    else:
        tb = min(tb, _round_up(B, 8))       # keep sublane-aligned tile size
    grid = (pl.cdiv(B, tb),)

    # ---- advisory cost estimate -----------------------------------------
    weight_bytes = sum(int(a.size) * a.dtype.itemsize
                       for a in (wb, bb, wc, bc, wo, bo))
    flops = 2 * B * (K * BRANCH_OUT + BRANCH_OUT * HIDDEN + HIDDEN)
    cost = pl.CostEstimate(
        flops=flops,
        transcendentals=0,
        bytes_accessed=B * K * in_bytes + B * 4 + weight_bytes)

    # ---- compiler params (explicit VMEM limit only when needed) ----------
    est_vmem = (2 * tb * K * in_bytes          # double-buffered input tiles
                + tb * BRANCH_OUT * 4          # f32 intermediate
                + 2 * tb * 4                   # double-buffered output tile
                + 2 * weight_bytes)            # resident weights (2 bufs)
    cp_kwargs = dict(dimension_semantics=("parallel",))
    if est_vmem > 30 * 1024 * 1024:
        cp_kwargs["vmem_limit_bytes"] = int(est_vmem * 5 // 4)

    def resident(arr):
        # Constant index_map -> fetched once, stays VMEM-resident.
        return pl.BlockSpec(arr.shape, lambda i: (0, 0))

    return pl.pallas_call(
        _fused_mlp_kernel,
        out_shape=jax.ShapeDtypeStruct((B, 1), jnp.float32),
        grid=grid,
        in_specs=[
            pl.BlockSpec((tb, K), lambda i: (i, 0)),   # streamed input tiles
            resident(wb), resident(bb),
            resident(wc), resident(bc),
            resident(wo), resident(bo),
        ],
        out_specs=pl.BlockSpec((tb, 1), lambda i: (i, 0)),
        compiler_params=pltpu.CompilerParams(**cp_kwargs),
        cost_estimate=cost,
    )(inputs, wb, bb, wc, bc, wo, bo)


def init_params(key):
    """Deterministic init mirroring nn.Linear shapes (stored as [in, out])."""
    def linear(key, fan_in, fan_out):
        kw, kb = jax.random.split(key)
        bound = 1.0 / jnp.sqrt(fan_in)
        w = jax.random.uniform(kw, (fan_in, fan_out), jnp.float32, -bound, bound)
        b = jax.random.uniform(kb, (fan_out,), jnp.float32, -bound, bound)
        return w, b

    k1, k2, k3, k4, k5 = jax.random.split(key, 5)
    w1, b1 = linear(k1, VALUE_TYPE_SHAPE, 32)     # dense1
    w2, b2 = linear(k2, EQUILIBRIUM_SHAPE, 32)    # dense2
    w3, b3 = linear(k3, SMILES_SHAPE, 64)         # dense3
    wc, bc = linear(k4, BRANCH_OUT, HIDDEN)       # concat_dense
    wo, bo = linear(k5, HIDDEN, 1)                # output_dense
    return (w1, b1, w2, b2, w3, b3, wc, bc, wo, bo)


def fuse_params(params):
    """Fold the 3 branch linears into one block-diagonal [2072,128] weight and
    a single [1,128] bias; cast matmul weights to bf16; keep the final 64->1
    weight as an f32 row for the VPU reduction."""
    (w1, b1, w2, b2, w3, b3, wc, bc, wo, bo) = params
    vt, eq = VALUE_TYPE_SHAPE, EQUILIBRIUM_SHAPE
    wb = jnp.zeros((TOTAL_FEATURES, BRANCH_OUT), jnp.float32)
    wb = wb.at[:vt, :32].set(w1)
    wb = wb.at[vt:vt + eq, 32:64].set(w2)
    wb = wb.at[vt + eq:, 64:128].set(w3)
    bb = jnp.concatenate([b1, b2, b3]).reshape(1, BRANCH_OUT)
    return (wb.astype(jnp.bfloat16), bb,
            wc.astype(jnp.bfloat16), bc.reshape(1, HIDDEN),
            wo.T.astype(jnp.float32),            # (1, 64) row
            bo.reshape(1, 1))


def reference(x_f32, fused_params):
    """Pure-JAX reference of the same math (bf16-rounded matmul operands,
    f32 accumulation) — equivalent to the original branch-wise forward by
    block-diagonality.  One-hot / fingerprint inputs are exact in bf16."""
    wb, bb, wc, bc, wo, bo = fused_params
    h = jax.nn.relu(x_f32 @ wb.astype(jnp.float32) + bb)
    h = jax.nn.relu(h.astype(jnp.bfloat16).astype(jnp.float32)
                    @ wc.astype(jnp.float32) + bc)
    return (h * wo).sum(axis=1, keepdims=True) + bo


if __name__ == "__main__":
    key = jax.random.PRNGKey(0)
    k_params, k_x1, k_x2 = jax.random.split(key, 3)

    raw_params = init_params(k_params)
    fused_params = fuse_params(raw_params)

    # --- Test 1: primary bf16-input path, B=8 ----------------------------
    B = 8
    bits = jax.random.bernoulli(k_x1, 0.3, (B, TOTAL_FEATURES))
    x_bf16 = bits.astype(jnp.bfloat16)      # producer emits bf16 directly
    x_f32 = bits.astype(jnp.float32)

    out = my_model_forward(x_bf16, fused_params)
    jax.block_until_ready(out)
    ref = reference(x_f32, fused_params)
    assert out.shape == (B, 1)
    assert jnp.allclose(out, ref, atol=1e-3, rtol=1e-3)

    # --- Test 2: partial last batch tile (B not a multiple of tb) --------
    B2 = 12
    bits2 = jax.random.bernoulli(k_x2, 0.3, (B2, TOTAL_FEATURES))
    out2 = my_model_forward(bits2.astype(jnp.bfloat16), fused_params, tb=8)
    jax.block_until_ready(out2)
    ref2 = reference(bits2.astype(jnp.float32), fused_params)
    assert out2.shape == (B2, 1)
    assert jnp.allclose(out2, ref2, atol=1e-3, rtol=1e-3)

    # --- Test 3: int8 dequant-on-load path (v5e/v6e bandwidth saver) -----
    out3 = my_model_forward(bits.astype(jnp.int8), fused_params)
    jax.block_until_ready(out3)
    assert jnp.allclose(out3, ref, atol=1e-3, rtol=1e-3)

    print("KERNEL_OK")
</pallas_src>

<mosaic_0001>
module attributes {stable_mosaic.version = 11 : i64} {
  func.func @_fused_mlp_kernel(%arg0: i32, %arg1: memref<8x2072xbf16, #tpu.memory_space<vmem>>, %arg2: memref<2072x128xbf16, #tpu.memory_space<vmem>>, %arg3: memref<1x128xf32, #tpu.memory_space<vmem>>, %arg4: memref<128x64xbf16, #tpu.memory_space<vmem>>, %arg5: memref<1x64xf32, #tpu.memory_space<vmem>>, %arg6: memref<1x64xf32, #tpu.memory_space<vmem>>, %arg7: memref<1x1xf32, #tpu.memory_space<vmem>>, %arg8: memref<8x1xf32, #tpu.memory_space<vmem>>) attributes {dimension_semantics = [#tpu.dimension_semantics<parallel>], iteration_bounds = array<i64: 1>, scalar_prefetch = 0 : i64, scratch_operands = 0 : i64, tpu.core_type = #tpu.core_type<tc>, window_params = [{transform_indices = @transform_0, window_bounds = array<i64: 8, 2072>}, {pipeline_mode = #tpu.pipeline_mode<synchronous>, transform_indices = @transform_1, window_bounds = array<i64: 2072, 128>}, {pipeline_mode = #tpu.pipeline_mode<synchronous>, transform_indices = @transform_2, window_bounds = array<i64: 1, 128>}, {pipeline_mode = #tpu.pipeline_mode<synchronous>, transform_indices = @transform_3, window_bounds = array<i64: 128, 64>}, {pipeline_mode = #tpu.pipeline_mode<synchronous>, transform_indices = @transform_4, window_bounds = array<i64: 1, 64>}, {pipeline_mode = #tpu.pipeline_mode<synchronous>, transform_indices = @transform_5, window_bounds = array<i64: 1, 64>}, {pipeline_mode = #tpu.pipeline_mode<synchronous>, transform_indices = @transform_6, window_bounds = array<i64: 1, 1>}, {transform_indices = @transform_7, window_bounds = array<i64: 8, 1>}]} {
    %c0 = arith.constant 0 : index
    %c0_0 = arith.constant 0 : index
    %0 = vector.load %arg1[%c0, %c0_0] : memref<8x2072xbf16, #tpu.memory_space<vmem>>, vector<8x2072xbf16>
    %c0_1 = arith.constant 0 : index
    %c0_2 = arith.constant 0 : index
    %1 = vector.load %arg2[%c0_1, %c0_2] : memref<2072x128xbf16, #tpu.memory_space<vmem>>, vector<2072x128xbf16>
    %cst = arith.constant dense<0.000000e+00> : vector<8x128xf32>
    %2 = tpu.matmul %0, %1, %cst {dimension_numbers = #tpu.dot_dimension_numbers<[1], [0], [0], [1], [0, 0, 1, 1], [], []>} : vector<8x2072xbf16>, vector<2072x128xbf16>, vector<8x128xf32> -> vector<8x128xf32>
    %c0_3 = arith.constant 0 : index
    %c0_4 = arith.constant 0 : index
    %3 = vector.load %arg3[%c0_3, %c0_4] : memref<1x128xf32, #tpu.memory_space<vmem>>, vector<1x128xf32>
    %4 = vector.broadcast %3 : vector<1x128xf32> to vector<8x128xf32>
    %5 = arith.addf %2, %4 : vector<8x128xf32>
    %cst_5 = arith.constant 0.000000e+00 : f32
    %6 = vector.broadcast %cst_5 : f32 to vector<8x128xf32>
    %7 = arith.maximumf %5, %6 : vector<8x128xf32>
    %8 = arith.truncf %7 : vector<8x128xf32> to vector<8x128xbf16>
    %c0_6 = arith.constant 0 : index
    %c0_7 = arith.constant 0 : index
    %9 = vector.load %arg4[%c0_6, %c0_7] : memref<128x64xbf16, #tpu.memory_space<vmem>>, vector<128x64xbf16>
    %cst_8 = arith.constant dense<0.000000e+00> : vector<8x64xf32>
    %10 = tpu.matmul %8, %9, %cst_8 {dimension_numbers = #tpu.dot_dimension_numbers<[1], [0], [0], [1], [0, 0, 1, 1], [], []>} : vector<8x128xbf16>, vector<128x64xbf16>, vector<8x64xf32> -> vector<8x64xf32>
    %c0_9 = arith.constant 0 : index
    %c0_10 = arith.constant 0 : index
    %11 = vector.load %arg5[%c0_9, %c0_10] : memref<1x64xf32, #tpu.memory_space<vmem>>, vector<1x64xf32>
    %12 = vector.broadcast %11 : vector<1x64xf32> to vector<8x64xf32>
    %13 = arith.addf %10, %12 : vector<8x64xf32>
    %cst_11 = arith.constant 0.000000e+00 : f32
    %14 = vector.broadcast %cst_11 : f32 to vector<8x64xf32>
    %15 = arith.maximumf %13, %14 : vector<8x64xf32>
    %c0_12 = arith.constant 0 : index
    %c0_13 = arith.constant 0 : index
    %16 = vector.load %arg6[%c0_12, %c0_13] : memref<1x64xf32, #tpu.memory_space<vmem>>, vector<1x64xf32>
    %17 = vector.broadcast %16 : vector<1x64xf32> to vector<8x64xf32>
    %18 = arith.mulf %15, %17 : vector<8x64xf32>
    %cst_14 = arith.constant dense<0.000000e+00> : vector<8xf32>
    %19 = vector.multi_reduction <add>, %18, %cst_14 [1] : vector<8x64xf32> to vector<8xf32>
    %20 = vector.shape_cast %19 : vector<8xf32> to vector<8x1xf32>
    %c0_15 = arith.constant 0 : index
    %c0_16 = arith.constant 0 : index
    %21 = vector.load %arg7[%c0_15, %c0_16] : memref<1x1xf32, #tpu.memory_space<vmem>>, vector<1x1xf32>
    %22 = vector.broadcast %21 : vector<1x1xf32> to vector<8x1xf32>
    %23 = arith.addf %20, %22 : vector<8x1xf32>
    %c0_17 = arith.constant 0 : index
    %c0_18 = arith.constant 0 : index
    %24 = vector.load %arg8[%c0_17, %c0_18] : memref<8x1xf32, #tpu.memory_space<vmem>>, vector<8x1xf32>
    tpu.vector_store %arg8[%c0_17, %c0_18], %23 {strides = array<i32>} : memref<8x1xf32, #tpu.memory_space<vmem>>, vector<8x1xf32>,
    return
  }
  func.func @transform_0(%arg0: i32) -> (i32, i32) {
    %c0_i32 = arith.constant 0 : i32
    %c0_i32_0 = arith.constant 0 : i32
    return %arg0, %c0_i32 : i32, i32
  }
  func.func @transform_1(%arg0: i32) -> (i32, i32) {
    %c0_i32 = arith.constant 0 : i32
    %c0_i32_0 = arith.constant 0 : i32
    %c0_i32_1 = arith.constant 0 : i32
    return %c0_i32, %c0_i32_0 : i32, i32
  }
  func.func @transform_2(%arg0: i32) -> (i32, i32) {
    %c0_i32 = arith.constant 0 : i32
    %c0_i32_0 = arith.constant 0 : i32
    %c0_i32_1 = arith.constant 0 : i32
    return %c0_i32, %c0_i32_0 : i32, i32
  }
  func.func @transform_3(%arg0: i32) -> (i32, i32) {
    %c0_i32 = arith.constant 0 : i32
    %c0_i32_0 = arith.constant 0 : i32
    %c0_i32_1 = arith.constant 0 : i32
    return %c0_i32, %c0_i32_0 : i32, i32
  }
  func.func @transform_4(%arg0: i32) -> (i32, i32) {
    %c0_i32 = arith.constant 0 : i32
    %c0_i32_0 = arith.constant 0 : i32
    %c0_i32_1 = arith.constant 0 : i32
    return %c0_i32, %c0_i32_0 : i32, i32
  }
  func.func @transform_5(%arg0: i32) -> (i32, i32) {
    %c0_i32 = arith.constant 0 : i32
    %c0_i32_0 = arith.constant 0 : i32
    %c0_i32_1 = arith.constant 0 : i32
    return %c0_i32, %c0_i32_0 : i32, i32
  }
  func.func @transform_6(%arg0: i32) -> (i32, i32) {
    %c0_i32 = arith.constant 0 : i32
    %c0_i32_0 = arith.constant 0 : i32
    %c0_i32_1 = arith.constant 0 : i32
    return %c0_i32, %c0_i32_0 : i32, i32
  }
  func.func @transform_7(%arg0: i32) -> (i32, i32) {
    %c0_i32 = arith.constant 0 : i32
    %c0_i32_0 = arith.constant 0 : i32
    return %arg0, %c0_i32 : i32, i32
  }
}

</mosaic_0001>

<bundles_post_ra>
// kernel: tpu_custom_call.1
= control target key start
LH: loop header
LB: loop body
LE: loop exit
PB: predicated region body
PF: predicated region fallthrough
CT: control target
= control target key end

     0   :  { %s2335_s0 = inlined_call_operand.vmem [shape: bf16[8,2072], index: 0, kind: input, shape index: {}]   ;;  %s2336_s1 = inlined_call_operand.hbm [shape: bf16[2072,128], index: 1, kind: input, shape index: {}]   ;;  %s2337_s2 = inlined_call_operand.vmem [shape: f32[1,128], index: 2, kind: input, shape index: {}]   ;;  %s2338_s3 = inlined_call_operand.vmem [shape: bf16[128,64], index: 3, kind: input, shape index: {}]   ;;  %s2339_s4 = inlined_call_operand.vmem [shape: f32[1,64], index: 4, kind: input, shape index: {}]   ;;  %s2340_s5 = inlined_call_operand.vmem [shape: f32[1,64], index: 5, kind: input, shape index: {}]   ;;  %s2341_s6 = inlined_call_operand.<no memory space> [shape: f32[1,1], index: 6, kind: input, shape index: {}]   ;;  %s2342_s7 = inlined_call_operand.vmem [shape: f32[8,1], index: 7, kind: output, shape index: {}]  }
   0x1   :  { %v12_v0 = vstv %s2341_s6 }
   0x2   :  { %13 = vst [vmem:[#allocation2] sm:$0x1] %v12_v0 }
   0x3   :  { %14 = vsyncpa [#allocation4], 0  ;;  %s2221_s26 = smov [#allocation3]  }
   0x4   :  { %s22_s27 = sshll.u32 %s2221_s26, 4  ;;  %s23_s27 = int_to_ptr.vmem [resolvable:$true] %s22_s27 }
   0x5   :  { %s2207_s28 = scalar_lea.vmem %s23_s27, 16576  ;;  %p2212_p1 = scmp.lt.s32.totalorder %s23_s27, %s23_s27 }
   0x6   :  { %p2208_p0 = scmp.ne.s32.totalorder %s23_s27, %s2207_s28  ;;  %p2213_p2 = scmp.lt.s32.totalorder %s2207_s28, %s2207_s28 }
   0x8   :  { %p2214_p3 = por %p2213_p2, %p2212_p1 }
   0xa   :  { %p2215_p4 = pnand %p2214_p3, %p2208_p0 }
   0xc   :  { %2218 = shalt.err (!%p2215_p4)
}
   0xd   :  { %s2222_s29 = smov 64   ;;  %s2223_s30 = smov 4  }
   0xe   :  { %28 = dma.hbm_to_vmem [thread:$0]  %s2336_s1, 16576, %s23_s27, [#allocation4], %s2222_s29, %s2222_s29, %s2223_s30  }
   0xf   :  { %2219 = dma.done.wait [#allocation4], 16576  }
  0x10   :  { %2220 = vsyncadd [#allocation4], 4294950720  ;;  %v2044_v1 = vld [vmem:[#allocation3 + $0x78] sm:$0xff]   ;;  %v2048_v5 = vld [vmem:[#allocation3 + $0x70] sm:$0xff]   ;;  %vm1158_vm0 = vcmask 1043456   ;;  %vm2225_vm1 = vmmov 0  }
  0x11   :  { %v2045_v2 = vld [vmem:[#allocation3 + $0xf8] sm:$0xff]   ;;  %1823 = vmatprep.subr.bf16.mxu0 %v2044_v1  ;;  %v2049_v6 = vld [vmem:[#allocation3 + $0xf0] sm:$0xff]   ;;  %v2052_v9 = vld [vmem:[#allocation3 + $0x68] sm:$0xff]   ;;  %vm1154_vm2 = vcmask 195584   ;;  %vm1644_vm3 = vcmask 523264   ;;  %vm1656_vm4 = vcmask 7168  }
  0x12   :  { %v2046_v3 = vld [vmem:[#allocation3 + $0x38] sm:$0xff]   ;;  %1845 = vmatprep.subr.bf16.mxu1 %v2045_v2  ;;  %v2050_v7 = vld [vmem:[#allocation3 + $0x30] sm:$0xff]   ;;  %v2053_v10 = vld [vmem:[#allocation3 + $0xe8] sm:$0xff]  }
  0x13   :  { %v2047_v4 = vld [vmem:[#allocation3 + $0xb8] sm:$0xff]   ;;  %1824 = vmatpush3.bf16.msra.mxu0 %v2046_v3  ;;  %v2051_v8 = vld [vmem:[#allocation3 + $0xb0] sm:$0xff]   ;;  %v2054_v11 = vld [vmem:[#allocation3 + $0x28] sm:$0xff]  }
  0x14   :  { %1846 = vmatpush3.bf16.msra.mxu1 %v2047_v4  ;;  %1825 = vmatprep.subr.bf16.mxu0 %v2048_v5  ;;  %v2055_v12 = vld [vmem:[#allocation3 + $0xa8] sm:$0xff]   ;;  %v2056_v13 = vld [vmem:[#allocation3 + $0x60] sm:$0xff]   ;;  %v2060_v17 = vld [vmem:[#allocation3 + $0x58] sm:$0xff]  }
  0x15   :  { %1847 = vmatprep.subr.bf16.mxu1 %v2049_v6  ;;  %v2057_v14 = vld [vmem:[#allocation3 + $0xe0] sm:$0xff]   ;;  %v2061_v18 = vld [vmem:[#allocation3 + $0xd8] sm:$0xff]   ;;  %v2064_v21 = vld [vmem:[#allocation3 + $0x50] sm:$0xff]  }
  0x16   :  { %v2058_v15 = vld [vmem:[#allocation3 + $0x20] sm:$0xff]   ;;  %v2062_v19 = vld [vmem:[#allocation3 + $0x18] sm:$0xff]   ;;  %v2065_v22 = vld [vmem:[#allocation3 + $0xd0] sm:$0xff]  }
  0x17   :  { %1826 = vmatpush3.bf16.msra.mxu0 %v2050_v7  ;;  %v2059_v16 = vld [vmem:[#allocation3 + $0xa0] sm:$0xff]   ;;  %v2063_v20 = vld [vmem:[#allocation3 + $0x98] sm:$0xff]   ;;  %v2066_v23 = vld [vmem:[#allocation3 + $0x10] sm:$0xff]  }
  0x18   :  { %1848 = vmatpush3.bf16.msra.mxu1 %v2051_v8  ;;  %1827 = vmatprep.subr.bf16.mxu0 %v2052_v9  ;;  %v2067_v24 = vld [vmem:[#allocation3 + $0x90] sm:$0xff]   ;;  %v2068_v25 = vld [vmem:[#allocation3 + $0x48] sm:$0xff]   ;;  %v2072_v29 = vld [vmem:[#allocation3 + $0x40] sm:$0xff]  }
  0x19   :  { %1849 = vmatprep.subr.bf16.mxu1 %v2053_v10  ;;  %v2069_v26 = vld [vmem:[#allocation3 + $0xc8] sm:$0xff]   ;;  %v2073_v30 = vld [vmem:[#allocation3 + $0xc0] sm:$0xff]   ;;  %v2080_v39 = vld [vmem:[#allocation3 + $0x178] sm:$0xff]  }
  0x1a   :  { %v2070_v27 = vld [vmem:[#allocation3 + $0x8] sm:$0xff]   ;;  %v2074_v31 = vld [vmem:[#allocation3] sm:$0xff]   ;;  %v2081_v40 = vld [vmem:[#allocation3 + $0x1f8] sm:$0xff]  }
  0x1b   :  { %1828 = vmatpush3.bf16.msra.mxu0 %v2054_v11  ;;  %v2071_v28 = vld [vmem:[#allocation3 + $0x88] sm:$0xff]   ;;  %v2075_v32 = vld [vmem:[#allocation3 + $0x80] sm:$0xff]   ;;  %v2082_v41 = vld [vmem:[#allocation3 + $0x138] sm:$0xff]  }
  0x1c   :  { %1850 = vmatpush3.bf16.msra.mxu1 %v2055_v12  ;;  %1829 = vmatprep.subr.bf16.mxu0 %v2056_v13  ;;  %v43_v33 = vld [vmem:[%s2335_s0] sm:$0xff]  ;;  %v44_v34 = vld [vmem:[%s2335_s0 + $0x8] sm:$0xff]  ;;  %v2084_v43 = vld [vmem:[#allocation3 + $0x170] sm:$0xff]  }
  0x1d   :  { %1851 = vmatprep.subr.bf16.mxu1 %v2057_v14  ;;  %v1664_v35 = vcombine.low %v43_v33, %v43_v33  ;;  %v1665_v36 = vcombine.high %v43_v33, %v43_v33  ;;  %v1666_v37 = vcombine.low %v44_v34, %v44_v34  ;;  %v1667_v38 = vcombine.high %v44_v34, %v44_v34  ;;  %v2083_v42 = vld [vmem:[#allocation3 + $0x1b8] sm:$0xff]   ;;  %v2085_v44 = vld [vmem:[#allocation3 + $0x1f0] sm:$0xff]   ;;  %v2088_v47 = vld [vmem:[#allocation3 + $0x168] sm:$0xff]  }
  0x1e   :  { %v2086_v45 = vld [vmem:[#allocation3 + $0x130] sm:$0xff]   ;;  %v2089_v48 = vld [vmem:[#allocation3 + $0x1e8] sm:$0xff]   ;;  %v2092_v51 = vld [vmem:[#allocation3 + $0x160] sm:$0xff]  }
  0x1f   :  { %1830 = vmatpush3.bf16.msra.mxu0 %v2058_v15  ;;  %1194 = vmatprep.mubr.bf16.mxu0 %v1665_v36  ;;  %v2087_v46 = vld [vmem:[#allocation3 + $0x1b0] sm:$0xff]   ;;  %v2090_v49 = vld [vmem:[#allocation3 + $0x128] sm:$0xff]   ;;  %v2093_v52 = vld [vmem:[#allocation3 + $0x1e0] sm:$0xff]  }
  0x20   :  { %1852 = vmatpush3.bf16.msra.mxu1 %v2059_v16  ;;  %1831 = vmatprep.subr.bf16.mxu0 %v2060_v17  ;;  %v2091_v50 = vld [vmem:[#allocation3 + $0x1a8] sm:$0xff]   ;;  %v2094_v53 = vld [vmem:[#allocation3 + $0x120] sm:$0xff]   ;;  %v2096_v55 = vld [vmem:[#allocation3 + $0x158] sm:$0xff]  }
  0x21   :  { %1853 = vmatprep.subr.bf16.mxu1 %v2061_v18  ;;  %1234 = vmatprep.mubr.bf16.mxu1 %v1667_v38  ;;  %v2095_v54 = vld [vmem:[#allocation3 + $0x1a0] sm:$0xff]   ;;  %v2097_v56 = vld [vmem:[#allocation3 + $0x1d8] sm:$0xff]   ;;  %v2100_v59 = vld [vmem:[#allocation3 + $0x150] sm:$0xff]  }
  0x22   :  { %v2098_v57 = vld [vmem:[#allocation3 + $0x118] sm:$0xff]   ;;  %v2101_v60 = vld [vmem:[#allocation3 + $0x1d0] sm:$0xff]   ;;  %v2104_v63 = vld [vmem:[#allocation3 + $0x148] sm:$0xff]  }
  0x23   :  { %1832 = vmatpush3.bf16.msra.mxu0 %v2062_v19  ;;  %v2099_v58 = vld [vmem:[#allocation3 + $0x198] sm:$0xff]   ;;  %v2102_v61 = vld [vmem:[#allocation3 + $0x110] sm:$0xff]   ;;  %v2105_v0 = vld [vmem:[#allocation3 + $0x1c8] sm:$0xff]  }
  0x24   :  { %1854 = vmatpush3.bf16.msra.mxu1 %v2063_v20  ;;  %1833 = vmatprep.subr.bf16.mxu0 %v2064_v21  ;;  %v2103_v62 = vld [vmem:[#allocation3 + $0x190] sm:$0xff]   ;;  %v2106_v1 = vld [vmem:[#allocation3 + $0x108] sm:$0xff]   ;;  %v2108_v3 = vld [vmem:[#allocation3 + $0x140] sm:$0xff]  }
  0x25   :  { %1855 = vmatprep.subr.bf16.mxu1 %v2065_v22  ;;  %v2107_v2 = vld [vmem:[#allocation3 + $0x188] sm:$0xff]   ;;  %v2109_v4 = vld [vmem:[#allocation3 + $0x1c0] sm:$0xff]   ;;  %v46_v10 = vld [vmem:[%s2335_s0 + $0x18] sm:$0xff] }
  0x26   :  { %v2110_v5 = vld [vmem:[#allocation3 + $0x100] sm:$0xff]   ;;  %v45_v7 = vld [vmem:[%s2335_s0 + $0x10] sm:$0xff]  ;;  %v1670_v11 = vcombine.low %v46_v10, %v46_v10  ;;  %v1671_v12 = vcombine.high %v46_v10, %v46_v10  ;;  %v2116_v13 = vld [vmem:[#allocation3 + $0x278] sm:$0xff]  }
  0x27   :  { %1834 = vmatpush3.bf16.msra.mxu0 %v2066_v23  ;;  %v2111_v6 = vld [vmem:[#allocation3 + $0x180] sm:$0xff]   ;;  %v1668_v8 = vcombine.low %v45_v7, %v45_v7  ;;  %v1669_v9 = vcombine.high %v45_v7, %v45_v7  ;;  %v2117_v14 = vld [vmem:[#allocation3 + $0x2f8] sm:$0xff]   ;;  %v2120_v17 = vld [vmem:[#allocation3 + $0x270] sm:$0xff]  }
  0x28   :  { %1856 = vmatpush3.bf16.msra.mxu1 %v2067_v24  ;;  %1835 = vmatprep.subr.bf16.mxu0 %v2068_v25  ;;  %v2118_v15 = vld [vmem:[#allocation3 + $0x238] sm:$0xff]   ;;  %v2121_v18 = vld [vmem:[#allocation3 + $0x2f0] sm:$0xff]   ;;  %v2124_v21 = vld [vmem:[#allocation3 + $0x268] sm:$0xff]  }
  0x29   :  { %1857 = vmatprep.subr.bf16.mxu1 %v2069_v26  ;;  %v2119_v16 = vld [vmem:[#allocation3 + $0x2b8] sm:$0xff]   ;;  %v2122_v19 = vld [vmem:[#allocation3 + $0x230] sm:$0xff]   ;;  %v2125_v22 = vld [vmem:[#allocation3 + $0x2e8] sm:$0xff]  }
  0x2a   :  { %v2123_v20 = vld [vmem:[#allocation3 + $0x2b0] sm:$0xff]   ;;  %v2126_v23 = vld [vmem:[#allocation3 + $0x228] sm:$0xff]   ;;  %v2128_v25 = vld [vmem:[#allocation3 + $0x260] sm:$0xff]  }
  0x2b   :  { %1836 = vmatpush3.bf16.msra.mxu0 %v2070_v27  ;;  %v2127_v24 = vld [vmem:[#allocation3 + $0x2a8] sm:$0xff]   ;;  %v2129_v26 = vld [vmem:[#allocation3 + $0x2e0] sm:$0xff]   ;;  %v2136_v33 = vld [vmem:[#allocation3 + $0x250] sm:$0xff]  }
  0x2c   :  { %1858 = vmatpush3.bf16.msra.mxu1 %v2071_v28  ;;  %1837 = vmatprep.subr.bf16.mxu0 %v2072_v29  ;;  %v2130_v27 = vld [vmem:[#allocation3 + $0x220] sm:$0xff]   ;;  %v2132_v29 = vld [vmem:[#allocation3 + $0x258] sm:$0xff]   ;;  %v2137_v34 = vld [vmem:[#allocation3 + $0x2d0] sm:$0xff]  }
  0x2d   :  { %1859 = vmatprep.subr.bf16.mxu1 %v2073_v30  ;;  %v2131_v28 = vld [vmem:[#allocation3 + $0x2a0] sm:$0xff]   ;;  %v2133_v30 = vld [vmem:[#allocation3 + $0x2d8] sm:$0xff]   ;;  %v2139_v36 = vld [vmem:[#allocation3 + $0x290] sm:$0xff]  }
  0x2e   :  { %v2141_v38 = vld [vmem:[#allocation3 + $0x2c8] sm:$0xff]   ;;  %v2172_v7 = vld [vmem:[#allocation3 + $0x350] sm:$0xff]  }
  0x2f   :  { %1838 = vmatpush3.bf16.msra.mxu0 %v2074_v31  ;;  %v2134_v31 = vld [vmem:[#allocation3 + $0x218] sm:$0xff]   ;;  %v2175_v10 = vld [vmem:[#allocation3 + $0x390] sm:$0xff]  }
  0x30   :  { %1860 = vmatpush3.bf16.msra.mxu1 %v2075_v32  ;;  %1867 = vmatprep.subr.bf16.mxu0 %v2080_v39  ;;  %v2135_v32 = vld [vmem:[#allocation3 + $0x298] sm:$0xff]   ;;  %v2142_v39 = vld [vmem:[#allocation3 + $0x208] sm:$0xff]  }
  0x31   :  { %1889 = vmatprep.subr.bf16.mxu1 %v2081_v40  ;;  %v2143_v40 = vld [vmem:[#allocation3 + $0x288] sm:$0xff]  }
  0x32   :  { %1195 = vmatmul.mubr.bf16.vlgmr.msra.gmra.mxu0 %v1664_v35  ;;  %v2138_v35 = vld [vmem:[#allocation3 + $0x210] sm:$0xff]  }
  0x33   :  { %1235 = vmatmul.mubr.bf16.vlgmr.msra.gmra.mxu1 %v1666_v37  ;;  %1868 = vmatpush3.bf16.msra.mxu0 %v2082_v41  ;;  %v2140_v37 = vld [vmem:[#allocation3 + $0x248] sm:$0xff]   ;;  %v2144_v41 = vld [vmem:[#allocation3 + $0x240] sm:$0xff]  }
  0x34   :  { %1890 = vmatpush3.bf16.msra.mxu1 %v2083_v42  ;;  %1869 = vmatprep.subr.bf16.mxu0 %v2084_v43  ;;  %v2145_v42 = vld [vmem:[#allocation3 + $0x2c0] sm:$0xff]  }
  0x35   :  { %1891 = vmatprep.subr.bf16.mxu1 %v2085_v44  ;;  %1274 = vmatprep.mubr.bf16.mxu0 %v1669_v9  ;;  %v2146_v43 = vld [vmem:[#allocation3 + $0x200] sm:$0xff]   ;;  %v2174_v9 = vld [vmem:[#allocation3 + $0x310] sm:$0xff]  }
  0x36   :  { %1314 = vmatprep.mubr.bf16.mxu1 %v1671_v12  ;;  %v2147_v44 = vld [vmem:[#allocation3 + $0x280] sm:$0xff]   ;;  %v2177_v12 = vld [vmem:[#allocation3 + $0x3c8] sm:$0xff]  }
  0x37   :  { %1870 = vmatpush3.bf16.msra.mxu0 %v2086_v45  ;;  %v47_v45 = vld [vmem:[%s2335_s0 + $0x20] sm:$0xff] }
  0x38   :  { %1892 = vmatpush3.bf16.msra.mxu1 %v2087_v46  ;;  %1871 = vmatprep.subr.bf16.mxu0 %v2088_v47  ;;  %v48_v46 = vld [vmem:[%s2335_s0 + $0x28] sm:$0xff]  ;;  %v1672_v47 = vcombine.low %v47_v45, %v47_v45 }
  0x39   :  { %1893 = vmatprep.subr.bf16.mxu1 %v2089_v48  ;;  %v1673_v48 = vcombine.high %v47_v45, %v47_v45 }
  0x3b   :  { %1872 = vmatpush3.bf16.msra.mxu0 %v2090_v49  ;;  %v1674_v49 = vcombine.low %v48_v46, %v48_v46 }
  0x3c   :  { %1894 = vmatpush3.bf16.msra.mxu1 %v2091_v50  ;;  %1873 = vmatprep.subr.bf16.mxu0 %v2092_v51  ;;  %v1675_v50 = vcombine.high %v48_v46, %v48_v46  ;;  %v2152_v51 = vld [vmem:[#allocation3 + $0x378] sm:$0xff]  }
  0x3d   :  { %1895 = vmatprep.subr.bf16.mxu1 %v2093_v52  ;;  %v2153_v52 = vld [vmem:[#allocation3 + $0x3f8] sm:$0xff]  }
  0x3f   :  { %1874 = vmatpush3.bf16.msra.mxu0 %v2094_v53  ;;  %v2154_v53 = vld [vmem:[#allocation3 + $0x338] sm:$0xff]  }
  0x40   :  { %1896 = vmatpush3.bf16.msra.mxu1 %v2095_v54  ;;  %1875 = vmatprep.subr.bf16.mxu0 %v2096_v55  ;;  %v2155_v54 = vld [vmem:[#allocation3 + $0x3b8] sm:$0xff]   ;;  %v2156_v55 = vld [vmem:[#allocation3 + $0x370] sm:$0xff]  }
  0x41   :  { %1897 = vmatprep.subr.bf16.mxu1 %v2097_v56  ;;  %v2157_v56 = vld [vmem:[#allocation3 + $0x3f0] sm:$0xff]  }
  0x43   :  { %1876 = vmatpush3.bf16.msra.mxu0 %v2098_v57  ;;  %v2158_v57 = vld [vmem:[#allocation3 + $0x330] sm:$0xff]  }
  0x44   :  { %1898 = vmatpush3.bf16.msra.mxu1 %v2099_v58  ;;  %1877 = vmatprep.subr.bf16.mxu0 %v2100_v59  ;;  %v2159_v58 = vld [vmem:[#allocation3 + $0x3b0] sm:$0xff]   ;;  %v2160_v59 = vld [vmem:[#allocation3 + $0x368] sm:$0xff]  }
  0x45   :  { %1899 = vmatprep.subr.bf16.mxu1 %v2101_v60  ;;  %v2161_v60 = vld [vmem:[#allocation3 + $0x3e8] sm:$0xff]  }
  0x47   :  { %1878 = vmatpush3.bf16.msra.mxu0 %v2102_v61  ;;  %v2162_v61 = vld [vmem:[#allocation3 + $0x328] sm:$0xff]  }
  0x48   :  { %1900 = vmatpush3.bf16.msra.mxu1 %v2103_v62  ;;  %1879 = vmatprep.subr.bf16.mxu0 %v2104_v63  ;;  %v2163_v62 = vld [vmem:[#allocation3 + $0x3a8] sm:$0xff]   ;;  %v2164_v63 = vld [vmem:[#allocation3 + $0x360] sm:$0xff]  }
  0x49   :  { %1901 = vmatprep.subr.bf16.mxu1 %v2105_v0  ;;  %v2165_v0 = vld [vmem:[#allocation3 + $0x3e0] sm:$0xff]  }
  0x4b   :  { %1880 = vmatpush3.bf16.msra.mxu0 %v2106_v1  ;;  %v2166_v1 = vld [vmem:[#allocation3 + $0x320] sm:$0xff]  }
  0x4c   :  { %1902 = vmatpush3.bf16.msra.mxu1 %v2107_v2  ;;  %1881 = vmatprep.subr.bf16.mxu0 %v2108_v3  ;;  %v2167_v2 = vld [vmem:[#allocation3 + $0x3a0] sm:$0xff]   ;;  %v2168_v3 = vld [vmem:[#allocation3 + $0x358] sm:$0xff]  }
  0x4d   :  { %1903 = vmatprep.subr.bf16.mxu1 %v2109_v4  ;;  %v2169_v4 = vld [vmem:[#allocation3 + $0x3d8] sm:$0xff]  }
  0x4f   :  { %1882 = vmatpush3.bf16.msra.mxu0 %v2110_v5  ;;  %v2170_v5 = vld [vmem:[#allocation3 + $0x318] sm:$0xff]  }
  0x50   :  { %1904 = vmatpush3.bf16.msra.mxu1 %v2111_v6  ;;  %1911 = vmatprep.subr.bf16.mxu0 %v2116_v13  ;;  %v2171_v6 = vld [vmem:[#allocation3 + $0x398] sm:$0xff]   ;;  %v2178_v13 = vld [vmem:[#allocation3 + $0x308] sm:$0xff]  }
  0x51   :  { %1933 = vmatprep.subr.bf16.mxu1 %v2117_v14  ;;  %v2179_v14 = vld [vmem:[#allocation3 + $0x388] sm:$0xff]  }
  0x52   :  { %1275 = vmatmul.mubr.bf16.vlgmr.msra.gmra.mxu0 %v1668_v8  ;;  %v2173_v8 = vld [vmem:[#allocation3 + $0x3d0] sm:$0xff]  }
  0x53   :  { %1315 = vmatmul.mubr.bf16.vlgmr.msra.gmra.mxu1 %v1670_v11  ;;  %1912 = vmatpush3.bf16.msra.mxu0 %v2118_v15  ;;  %v2176_v11 = vld [vmem:[#allocation3 + $0x348] sm:$0xff]   ;;  %v2180_v15 = vld [vmem:[#allocation3 + $0x340] sm:$0xff]  }
  0x54   :  { %1934 = vmatpush3.bf16.msra.mxu1 %v2119_v16  ;;  %1913 = vmatprep.subr.bf16.mxu0 %v2120_v17  ;;  %v2181_v16 = vld [vmem:[#allocation3 + $0x3c0] sm:$0xff]  }
  0x55   :  { %1935 = vmatprep.subr.bf16.mxu1 %v2121_v18  ;;  %1354 = vmatprep.mubr.bf16.mxu0 %v1673_v48  ;;  %v2182_v17 = vld [vmem:[#allocation3 + $0x300] sm:$0xff]  }
  0x56   :  { %1394 = vmatprep.mubr.bf16.mxu1 %v1675_v50  ;;  %v2183_v18 = vld [vmem:[#allocation3 + $0x380] sm:$0xff]  }
  0x57   :  { %1914 = vmatpush3.bf16.msra.mxu0 %v2122_v19  ;;  %v49_v19 = vld [vmem:[%s2335_s0 + $0x30] sm:$0xff] }
  0x58   :  { %1936 = vmatpush3.bf16.msra.mxu1 %v2123_v20  ;;  %1915 = vmatprep.subr.bf16.mxu0 %v2124_v21  ;;  %v50_v20 = vld [vmem:[%s2335_s0 + $0x38] sm:$0xff]  ;;  %v1676_v21 = vcombine.low %v49_v19, %v49_v19 }
  0x59   :  { %1937 = vmatprep.subr.bf16.mxu1 %v2125_v22  ;;  %v1677_v22 = vcombine.high %v49_v19, %v49_v19 }
  0x5b   :  { %1916 = vmatpush3.bf16.msra.mxu0 %v2126_v23  ;;  %v1678_v23 = vcombine.low %v50_v20, %v50_v20 }
  0x5c   :  { %1938 = vmatpush3.bf16.msra.mxu1 %v2127_v24  ;;  %1917 = vmatprep.subr.bf16.mxu0 %v2128_v25  ;;  %v2188_v24 = vld [vmem:[#allocation3 + $0x408] ss:$0 sps:$4 sm:$0xff]   ;;  %v1679_v25 = vcombine.high %v50_v20, %v50_v20 }
  0x5d   :  { %1939 = vmatprep.subr.bf16.mxu1 %v2129_v26  ;;  %v2224_v26 = vmov 0.0  }
  0x5f   :  { %1918 = vmatpush3.bf16.msra.mxu0 %v2130_v27  ;;  %v1160_v27 = vsel %vm1158_vm0, %v2188_v24, 0 }
  0x60   :  { %1940 = vmatpush3.bf16.msra.mxu1 %v2131_v28  ;;  %1919 = vmatprep.subr.bf16.mxu0 %v2132_v29  ;;  %v2189_v28 = vld [vmem:[#allocation3 + $0x400] sm:$0xff]   ;;  %v2190_v29 = vld [vmem:[%s2335_s0 + $0x40] ss:$0 sps:$4 sm:$0xff]  }
  0x61   :  { %1941 = vmatprep.subr.bf16.mxu1 %v2133_v30  ;;  %v2191_v30 = vld [vmem:[%s2338_s3 + $0x38] sm:$0xff]  }
  0x63   :  { %1920 = vmatpush3.bf16.msra.mxu0 %v2134_v31  ;;  %v2192_v31 = vld [vmem:[%s2338_s3 + $0x30] sm:$0xff]  }
  0x64   :  { %1942 = vmatpush3.bf16.msra.mxu1 %v2135_v32  ;;  %1921 = vmatprep.subr.bf16.mxu0 %v2136_v33  ;;  %v2193_v32 = vld [vmem:[%s2338_s3 + $0x28] sm:$0xff]   ;;  %v2194_v33 = vld [vmem:[%s2338_s3 + $0x20] sm:$0xff]  }
  0x65   :  { %1943 = vmatprep.subr.bf16.mxu1 %v2137_v34  ;;  %v2195_v34 = vld [vmem:[%s2338_s3 + $0x18] sm:$0xff]  }
  0x67   :  { %1922 = vmatpush3.bf16.msra.mxu0 %v2138_v35  ;;  %v2196_v35 = vld [vmem:[%s2338_s3 + $0x10] sm:$0xff]  }
  0x68   :  { %1944 = vmatpush3.bf16.msra.mxu1 %v2139_v36  ;;  %1923 = vmatprep.subr.bf16.mxu0 %v2140_v37  ;;  %v2197_v36 = vld [vmem:[%s2338_s3 + $0x8] sm:$0xff]   ;;  %v2198_v37 = vld [vmem:[%s2338_s3] sm:$0xff]  }
  0x69   :  { %1945 = vmatprep.subr.bf16.mxu1 %v2141_v38 }
  0x6b   :  { %1924 = vmatpush3.bf16.msra.mxu0 %v2142_v39 }
  0x6c   :  { %1946 = vmatpush3.bf16.msra.mxu1 %v2143_v40  ;;  %1925 = vmatprep.subr.bf16.mxu0 %v2144_v41  ;;  %v1663_v40 = vld [vmem:[%s2337_s2] ss:$0 sm:$0xff] }
  0x6d   :  { %1947 = vmatprep.subr.bf16.mxu1 %v2145_v42 }
  0x6f   :  { %1926 = vmatpush3.bf16.msra.mxu0 %v2146_v43 }
  0x70   :  { %1948 = vmatpush3.bf16.msra.mxu1 %v2147_v44  ;;  %1955 = vmatprep.subr.bf16.mxu0 %v2152_v51 }
  0x71   :  { %1977 = vmatprep.subr.bf16.mxu1 %v2153_v52 }
  0x72   :  { %1355 = vmatmul.mubr.bf16.vlgmr.msra.gmra.mxu0 %v1672_v47 }
  0x73   :  { %1395 = vmatmul.mubr.bf16.vlgmr.msra.gmra.mxu1 %v1674_v49  ;;  %1956 = vmatpush3.bf16.msra.mxu0 %v2154_v53 }
  0x74   :  { %1978 = vmatpush3.bf16.msra.mxu1 %v2155_v54  ;;  %1957 = vmatprep.subr.bf16.mxu0 %v2156_v55 }
  0x75   :  { %1979 = vmatprep.subr.bf16.mxu1 %v2157_v56  ;;  %1434 = vmatprep.mubr.bf16.mxu0 %v1677_v22 }
  0x76   :  { %1474 = vmatprep.mubr.bf16.mxu1 %v1679_v25 }
  0x77   :  { %1958 = vmatpush3.bf16.msra.mxu0 %v2158_v57 }
  0x78   :  { %1980 = vmatpush3.bf16.msra.mxu1 %v2159_v58  ;;  %1959 = vmatprep.subr.bf16.mxu0 %v2160_v59 }
  0x79   :  { %1981 = vmatprep.subr.bf16.mxu1 %v2161_v60 }
  0x7b   :  { %1960 = vmatpush3.bf16.msra.mxu0 %v2162_v61 }
  0x7c   :  { %1982 = vmatpush3.bf16.msra.mxu1 %v2163_v62  ;;  %1961 = vmatprep.subr.bf16.mxu0 %v2164_v63 }
  0x7d   :  { %1983 = vmatprep.subr.bf16.mxu1 %v2165_v0 }
  0x7f   :  { %1962 = vmatpush3.bf16.msra.mxu0 %v2166_v1 }
  0x80   :  { %1984 = vmatpush3.bf16.msra.mxu1 %v2167_v2  ;;  %1963 = vmatprep.subr.bf16.mxu0 %v2168_v3 }
  0x81   :  { %1985 = vmatprep.subr.bf16.mxu1 %v2169_v4 }
  0x83   :  { %1964 = vmatpush3.bf16.msra.mxu0 %v2170_v5 }
  0x84   :  { %1986 = vmatpush3.bf16.msra.mxu1 %v2171_v6  ;;  %1965 = vmatprep.subr.bf16.mxu0 %v2172_v7 }
  0x85   :  { %1987 = vmatprep.subr.bf16.mxu1 %v2173_v8 }
  0x87   :  { %1966 = vmatpush3.bf16.msra.mxu0 %v2174_v9 }
  0x88   :  { %1988 = vmatpush3.bf16.msra.mxu1 %v2175_v10  ;;  %1967 = vmatprep.subr.bf16.mxu0 %v2176_v11 }
  0x89   :  { %1989 = vmatprep.subr.bf16.mxu1 %v2177_v12 }
  0x8b   :  { %1968 = vmatpush3.bf16.msra.mxu0 %v2178_v13 }
  0x8c   :  { %1990 = vmatpush3.bf16.msra.mxu1 %v2179_v14  ;;  %1969 = vmatprep.subr.bf16.mxu0 %v2180_v15 }
  0x8d   :  { %1991 = vmatprep.subr.bf16.mxu1 %v2181_v16 }
  0x8f   :  { %1970 = vmatpush3.bf16.msra.mxu0 %v2182_v17 }
  0x90   :  { %1992 = vmatpush3.bf16.msra.mxu1 %v2183_v18  ;;  %2011 = vmatprep.subr.bf16.mxu0 %v2224_v26 }
  0x91   :  { %2019 = vmatprep.subr.bf16.mxu1 %v2224_v26 }
  0x92   :  { %1435 = vmatmul.mubr.bf16.vlgmr.msra.gmra.mxu0 %v1676_v21 }
  0x93   :  { %1475 = vmatmul.mubr.bf16.vlgmr.msra.gmra.mxu1 %v1678_v23  ;;  %2012 = vmatpush3.bf16.msra.mxu0 %v1160_v27 }
  0x94   :  { %2013 = vmatprep.subr.bf16.mxu0 %v2224_v26  ;;  %2015 = vmatprep.mubr.msk.bf16.mxu0 %vm2225_vm1, %v2224_v26 }
  0x95   :  { %2035 = vmatprep.mubr.msk.bf16.mxu1 %vm2225_vm1, %v2224_v26  ;;  %2020 = vmatpush3.bf16.msra.mxu1 %v2191_v30  ;;  %v1812_v30 = vld [vmem:[%s2339_s4] ss:$0 sm:$0xff] }
  0x96   :  { %2021 = vmatprep.subr.bf16.mxu1 %v2224_v26 }
  0x97   :  { %2014 = vmatpush3.bf16.msra.mxu0 %v2189_v28 }
  0x99   :  { %2022 = vmatpush3.bf16.msra.mxu1 %v2192_v31 }
  0x9a   :  { %2016 = vmatmul.mubr.msk.bf16.vlgmr.msra.gmra.mxu0 %vm1154_vm2, %v2190_v29  ;;  %2023 = vmatprep.subr.bf16.mxu1 %v2224_v26 }
  0x9d   :  { %2024 = vmatpush3.bf16.msra.mxu1 %v2193_v32 }
  0x9e   :  { %2025 = vmatprep.subr.bf16.mxu1 %v2224_v26 }
  0xa1   :  { %2026 = vmatpush3.bf16.msra.mxu1 %v2194_v33 }
  0xa2   :  { %2027 = vmatprep.subr.bf16.mxu1 %v2224_v26 }
  0xa5   :  { %2028 = vmatpush3.bf16.msra.mxu1 %v2195_v34  ;;  %v1821_v34 = vld [vmem:[%s2340_s5] ss:$0 sm:$0xff] }
  0xa6   :  { %2029 = vmatprep.subr.bf16.mxu1 %v2224_v26 }
  0xa9   :  { %2030 = vmatpush3.bf16.msra.mxu1 %v2196_v35 }
  0xaa   :  { %2031 = vmatprep.subr.bf16.mxu1 %v2224_v26 }
  0xad   :  { %2032 = vmatpush3.bf16.msra.mxu1 %v2197_v36 }
  0xae   :  { %2033 = vmatprep.subr.bf16.mxu1 %v2224_v26 }
  0xb1   :  { %2034 = vmatpush3.bf16.msra.mxu1 %v2198_v37 }
  0xf2   :  { %v1839_v38 = vpop.f32.mrf.mxu0 }
  0xf3   :  { %v1861_v39 = vpop.f32.mrf.mxu1 }
  0xf4   :  { %v1840_v41 = vpop.f32.mrf.mxu0 }
  0xf5   :  { %v1862_v42 = vpop.f32.mrf.mxu1  ;;  %v1841_v43 = vadd.f32 %v1840_v41, %v1839_v38 }
  0xf6   :  { %v1863_v44 = vadd.f32 %v1862_v42, %v1861_v39  ;;  %v1842_v45 = vpop.f32.mrf.mxu0 }
  0xf7   :  { %v1864_v46 = vpop.f32.mrf.mxu1  ;;  %v1197_v47 = vadd.f32 %v1841_v43, %v1663_v40  ;;  %v1822_v40 = vld [vmem:[#allocation2] ss:$0 sm:$0xff] }
  0xf8   :  { %v1843_v48 = vpop.f32.mrf.mxu0 }
  0xf9   :  { %v1865_v49 = vpop.f32.mrf.mxu1  ;;  %v1237_v50 = vadd.f32 %v1863_v44, %v1197_v47 }
 0x112   :  { %v1883_v51 = vpop.f32.mrf.mxu0 }
 0x113   :  { %v1905_v52 = vpop.f32.mrf.mxu1 }
 0x114   :  { %v1884_v53 = vpop.f32.mrf.mxu0 }
 0x115   :  { %v1906_v54 = vpop.f32.mrf.mxu1  ;;  %v1885_v3 = vadd.f32 %v1884_v53, %v1883_v51 }
 0x116   :  { %v1886_v55 = vpop.f32.mrf.mxu0  ;;  %v1907_v5 = vadd.f32 %v1906_v54, %v1905_v52 }
 0x117   :  { %v1908_v56 = vpop.f32.mrf.mxu1  ;;  %v1277_v4 = vadd.f32 %v1885_v3, %v1237_v50 }
 0x118   :  { %v1887_v57 = vpop.f32.mrf.mxu0 }
 0x119   :  { %v1909_v58 = vpop.f32.mrf.mxu1  ;;  %v1317_v7 = vadd.f32 %v1907_v5, %v1277_v4 }
 0x132   :  { %v1927_v59 = vpop.f32.mrf.mxu0 }
 0x133   :  { %v1949_v60 = vpop.f32.mrf.mxu1 }
 0x134   :  { %v1928_v61 = vpop.f32.mrf.mxu0 }
 0x135   :  { %v1950_v62 = vpop.f32.mrf.mxu1  ;;  %v1929_v6 = vadd.f32 %v1928_v61, %v1927_v59 }
 0x136   :  { %v1930_v63 = vpop.f32.mrf.mxu0  ;;  %v1951_v9 = vadd.f32 %v1950_v62, %v1949_v60 }
 0x137   :  { %v1952_v0 = vpop.f32.mrf.mxu1  ;;  %v1357_v8 = vadd.f32 %v1929_v6, %v1317_v7 }
 0x138   :  { %v1931_v1 = vpop.f32.mrf.mxu0 }
 0x139   :  { %v1953_v2 = vpop.f32.mrf.mxu1  ;;  %v1397_v13 = vadd.f32 %v1951_v9, %v1357_v8 }
 0x152   :  { %v1971_v10 = vpop.f32.mrf.mxu0 }
 0x153   :  { %v1993_v11 = vpop.f32.mrf.mxu1 }
 0x154   :  { %v1972_v12 = vpop.f32.mrf.mxu0 }
 0x155   :  { %v1973_v14 = vadd.f32 %v1972_v12, %v1971_v10  ;;  %v1994_v15 = vpop.f32.mrf.mxu1 }
 0x156   :  { %v1974_v16 = vpop.f32.mrf.mxu0  ;;  %v1995_v18 = vadd.f32 %v1994_v15, %v1993_v11 }
 0x157   :  { %v1437_v17 = vadd.f32 %v1973_v14, %v1397_v13  ;;  %v1996_v19 = vpop.f32.mrf.mxu1 }
 0x158   :  { %v1975_v20 = vpop.f32.mrf.mxu0 }
 0x159   :  { %v1997_v21 = vpop.f32.mrf.mxu1  ;;  %v1477_v22 = vadd.f32 %v1995_v18, %v1437_v17 }
 0x15a   :  { %v1516_v23 = vpop.f32.mrf.mxu0 }
 0x15b   :  { %v1517_v24 = vadd.f32 %v1516_v23, %v1477_v22 }
 0x15c   :  { %v2017_v25 = vpop.f32.mrf.mxu0 }
 0x15d   :  { %v1522_v26 = vmax.f32 %v1517_v24, 0.0 }
 0x15e   :  { %v1519_v27 = vpop.f32.mrf.mxu0 }
 0x15f   :  { %v1523_v28 = vpack.c.bf16 %v1522_v26, %v1522_v26 }
 0x160   :  { %v2018_v29 = vpop.f32.mrf.mxu0 }
 0x161   :  { %2036 = vmatmul.mubr.bf16.vlgmr.msra.gmra.mxu1 %v1523_v28 }
 0x221   :  { %v1629_v31 = vpop.f32.mrf.mxu1 }
 0x222   :  { %v1630_v32 = vadd.f32 %v1812_v30, %v1629_v31 }
 0x223   :  { %v2037_v33 = vpop.f32.mrf.mxu1 }
 0x224   :  { %v1635_v35 = vmax.f32 %v1630_v32, 0.0 }
 0x225   :  { %v1632_v36 = vpop.f32.mrf.mxu1 }
 0x226   :  { %v1643_v37 = vmul.f32 %v1821_v34, %v1635_v35 }
 0x227   :  { %v2038_v38 = vpop.f32.mrf.mxu1 }
 0x228   :  { %v1645_v39 = vsel %vm1644_vm3, %v1643_v37, 0.0 }
 0x229   :  { %1646 = vadd.xlane.f32.xlu0 %v1645_v39 }
 0x2b2   :  { %v1647_v41 = vpop.xlane.xlu0 %1646 }
 0x2b3   :  { %v1655_v42 = vadd.f32 %v1822_v40, %v1647_v41 }
 0x2b5   :  { %1657 = vst.msk [vmem:[%s2342_s7] sm:$0xff] %vm1656_vm4, %v1655_v42 }
 0x2b6   :  { %1662 = vsyncpa [#allocation4], 1 }

</bundles_post_ra>
